<compile_context>
chip_gen: v5e
topology: v5e:2x2
jax: 0.10.0
libtpu: 0.0.40
codegen_flags: <defaults>
</compile_context>

<pallas_src>
import functools

import jax
import jax.numpy as jnp
import numpy as np
from jax.experimental import pallas as pl
from jax.experimental.pallas import tpu as pltpu


def _bigram_train_kernel(idx_ref, tgt_ref, row_ref, logits_ref, loss_ref,
                         acc_ref, *, vocab_size, n_rows):
    # idx_ref, tgt_ref : (N,) int32 in SMEM (scalar-prefetched token / target ids)
    # row_ref          : (1, 1, Vp) f32 -- embedding row gathered for this step
    # logits_ref       : (1, 1, Vp) f32 -- logits row (lane-dense output block)
    # loss_ref         : (1, 1)     f32 -- final mean loss (written at last step)
    # acc_ref          : (1, 1)     f32 -- VMEM scratch loss accumulator
    i = pl.program_id(0)

    @pl.when(i == 0)
    def _():
        acc_ref[...] = jnp.zeros_like(acc_ref)

    # Embedding lookup: the row was already DMA-gathered by the BlockSpec
    # index_map (table block index = idx[i]); forward it to the logits output.
    logits_ref[...] = row_ref[...]

    # Cross-entropy contribution of this row (padded lanes masked to -inf).
    row = row_ref[0]                                             # (1, Vp)
    lane = jax.lax.broadcasted_iota(jnp.int32, row.shape, 1)     # (1, Vp)
    masked = jnp.where(lane < vocab_size, row, -jnp.inf)
    m = jnp.max(masked, axis=-1, keepdims=True)                  # (1, 1)
    lse = m + jnp.log(jnp.sum(jnp.exp(masked - m), axis=-1, keepdims=True))
    tgt = tgt_ref[i]                                             # scalar (SMEM)
    tgt_logit = jnp.sum(jnp.where(lane == tgt, row, 0.0),
                        axis=-1, keepdims=True)                  # (1, 1)
    acc_ref[...] += lse - tgt_logit

    @pl.when(i == n_rows - 1)
    def _():
        loss_ref[...] = acc_ref[...] * (1.0 / n_rows)


def _bigram_infer_kernel(idx_ref, row_ref, logits_ref):
    # Gather-only path: no cross-entropy work for targets=None.
    del idx_ref  # only consumed by the index_map that drives the row gather
    logits_ref[...] = row_ref[...]


def _pad_table(table):
    v = table.shape[0]
    vp = ((v + 127) // 128) * 128
    table_p = jnp.pad(table.astype(jnp.float32), ((0, 0), (0, vp - v)))
    # (V, 1, Vp): keeps the gathered block's last-two dims (1, Vp) legal & dense.
    return table_p.reshape(v, 1, vp), vp


@jax.jit
def _bigram_train_jit(idx, targets, table):
    b, t = idx.shape
    v = table.shape[0]
    n = b * t
    table_p, vp = _pad_table(table)
    idx_flat = idx.reshape(n).astype(jnp.int32)
    tgt_flat = targets.reshape(n).astype(jnp.int32)

    kernel = functools.partial(_bigram_train_kernel, vocab_size=v, n_rows=n)

    grid_spec = pltpu.PrefetchScalarGridSpec(
        num_scalar_prefetch=2,           # idx, targets land in SMEM
        grid=(n,),
        in_specs=[
            # Row gather: the table's row-block index is the prefetched token id.
            pl.BlockSpec((1, 1, vp), lambda i, idx_s, tgt_s: (idx_s[i], 0, 0)),
        ],
        out_specs=(
            pl.BlockSpec((1, 1, vp), lambda i, idx_s, tgt_s: (i, 0, 0)),  # logits
            pl.BlockSpec((1, 1), lambda i, idx_s, tgt_s: (0, 0)),         # loss
        ),
        scratch_shapes=[pltpu.VMEM((1, 1), jnp.float32)],
    )

    logits_p, loss = pl.pallas_call(
        kernel,
        grid_spec=grid_spec,
        out_shape=(
            jax.ShapeDtypeStruct((n, 1, vp), jnp.float32),
            jax.ShapeDtypeStruct((1, 1), jnp.float32),
        ),
        compiler_params=pltpu.CompilerParams(
            # Sequential loss accumulation across the row axis.
            dimension_semantics=("arbitrary",),
        ),
    )(idx_flat, tgt_flat, table_p)

    # PyTorch returns logits.view(B*T, C) on the training path.
    logits = logits_p.reshape(n, vp)[:, :v]
    return logits, loss[0, 0]


@jax.jit
def _bigram_infer_jit(idx, table):
    b, t = idx.shape
    v = table.shape[0]
    n = b * t
    table_p, vp = _pad_table(table)
    idx_flat = idx.reshape(n).astype(jnp.int32)

    grid_spec = pltpu.PrefetchScalarGridSpec(
        num_scalar_prefetch=1,
        grid=(n,),
        in_specs=[pl.BlockSpec((1, 1, vp), lambda i, idx_s: (idx_s[i], 0, 0))],
        out_specs=pl.BlockSpec((1, 1, vp), lambda i, idx_s: (i, 0, 0)),
    )

    logits_p = pl.pallas_call(
        _bigram_infer_kernel,
        grid_spec=grid_spec,
        out_shape=jax.ShapeDtypeStruct((n, 1, vp), jnp.float32),
        compiler_params=pltpu.CompilerParams(
            # Rows are independent -> shard across both TensorCores on v7x.
            dimension_semantics=("parallel",),
        ),
    )(idx_flat, table_p)

    return logits_p.reshape(b, t, vp)[..., :v]


def bigram_forward(idx, table, targets=None):
    """Mirrors BigramLanguageModel.forward: returns (logits, loss)."""
    if targets is None:
        return _bigram_infer_jit(idx, table), None
    return _bigram_train_jit(idx, targets, table)


if __name__ == "__main__":
    # Small, deterministic problem: vocab_size=65 (tiny-shakespeare-like),
    # batch=2, block/seq length=8.
    vocab_size = 65
    B, T = 2, 8

    key = jax.random.PRNGKey(0)
    k_table, k_idx, k_tgt = jax.random.split(key, 3)

    # nn.Embedding default init: N(0, 1).
    table = jax.random.normal(k_table, (vocab_size, vocab_size),
                              dtype=jnp.float32)
    idx = jax.random.randint(k_idx, (B, T), 0, vocab_size, dtype=jnp.int32)
    targets = jax.random.randint(k_tgt, (B, T), 0, vocab_size,
                                 dtype=jnp.int32)

    # Training path: (B*T, V) logits + scalar loss (matches PyTorch).
    logits, loss = bigram_forward(idx, table, targets)
    jax.block_until_ready((logits, loss))

    # Inference path (targets=None): (B, T, V) logits, loss is None.
    logits_inf, loss_none = bigram_forward(idx, table, targets=None)
    jax.block_until_ready(logits_inf)
    assert loss_none is None

    # Pure-JAX reference check.
    ref_logits_inf = table[idx]                               # (B, T, V)
    ref_logits_train = ref_logits_inf.reshape(B * T, vocab_size)
    rt = targets.reshape(B * T)
    ref_lse = jax.scipy.special.logsumexp(ref_logits_train, axis=-1)
    ref_loss = jnp.mean(ref_lse - ref_logits_train[jnp.arange(B * T), rt])

    np.testing.assert_allclose(np.asarray(logits),
                               np.asarray(ref_logits_train),
                               rtol=1e-5, atol=1e-5)
    np.testing.assert_allclose(np.asarray(logits_inf),
                               np.asarray(ref_logits_inf),
                               rtol=1e-5, atol=1e-5)
    np.testing.assert_allclose(np.asarray(loss), np.asarray(ref_loss),
                               rtol=1e-5, atol=1e-5)

    print("KERNEL_OK")
</pallas_src>

<mosaic_0001>
module attributes {stable_mosaic.version = 11 : i64} {
  func.func @_bigram_train_kernel(%arg0: i32, %arg1: memref<16xi32, #tpu.memory_space<smem>>, %arg2: memref<16xi32, #tpu.memory_space<smem>>, %arg3: memref<1x1x128xf32, #tpu.memory_space<vmem>>, %arg4: memref<1x1x128xf32, #tpu.memory_space<vmem>>, %arg5: memref<1x1xf32, #tpu.memory_space<vmem>>, %arg6: memref<1x1xf32, #tpu.memory_space<vmem>>) attributes {dimension_semantics = [#tpu.dimension_semantics<arbitrary>], iteration_bounds = array<i64: 16>, scalar_prefetch = 2 : i64, scratch_operands = 1 : i64, tpu.core_type = #tpu.core_type<tc>, window_params = [{transform_indices = @transform_0, window_bounds = array<i64: 1, 1, 128>}, {transform_indices = @transform_1, window_bounds = array<i64: 1, 1, 128>}, {pipeline_mode = #tpu.pipeline_mode<synchronous>, transform_indices = @transform_2, window_bounds = array<i64: 1, 1>}]} {
    %c0_i32 = arith.constant 0 : i32
    %0 = arith.cmpi eq, %arg0, %c0_i32 : i32
    %1 = arith.extui %0 : i1 to i32
    %c0_i32_0 = arith.constant 0 : i32
    %2 = arith.cmpi ne, %1, %c0_i32_0 : i32
    scf.if %2 {
      %cst_18 = arith.constant 0.000000e+00 : f32
      %36 = vector.broadcast %cst_18 : f32 to vector<1x1xf32>
      %c0_19 = arith.constant 0 : index
      %c0_20 = arith.constant 0 : index
      %37 = vector.load %arg6[%c0_19, %c0_20] : memref<1x1xf32, #tpu.memory_space<vmem>>, vector<1x1xf32>
      tpu.vector_store %arg6[%c0_19, %c0_20], %36 {strides = array<i32>} : memref<1x1xf32, #tpu.memory_space<vmem>>, vector<1x1xf32>,
    } else {
    }
    %c0 = arith.constant 0 : index
    %c0_1 = arith.constant 0 : index
    %c0_2 = arith.constant 0 : index
    %3 = vector.load %arg3[%c0, %c0_1, %c0_2] : memref<1x1x128xf32, #tpu.memory_space<vmem>>, vector<1x1x128xf32>
    %c0_3 = arith.constant 0 : index
    %c0_4 = arith.constant 0 : index
    %c0_5 = arith.constant 0 : index
    %4 = vector.load %arg4[%c0_3, %c0_4, %c0_5] : memref<1x1x128xf32, #tpu.memory_space<vmem>>, vector<1x1x128xf32>
    tpu.vector_store %arg4[%c0_3, %c0_4, %c0_5], %3 {strides = array<i32>} : memref<1x1x128xf32, #tpu.memory_space<vmem>>, vector<1x1x128xf32>,
    %c0_6 = arith.constant 0 : index
    %c0_7 = arith.constant 0 : index
    %c0_8 = arith.constant 0 : index
    %5 = vector.load %arg3[%c0_6, %c0_7, %c0_8] : memref<1x1x128xf32, #tpu.memory_space<vmem>>, vector<1x1x128xf32>
    %6 = vector.shape_cast %5 : vector<1x1x128xf32> to vector<1x128xf32>
    %7 = tpu.iota {dimensions = array<i32: 1>} : vector<1x128xi32>
    %c65_i32 = arith.constant 65 : i32
    %8 = vector.broadcast %c65_i32 : i32 to vector<1x128xi32>
    %9 = arith.cmpi slt, %7, %8 : vector<1x128xi32>
    %cst = arith.constant 0xFF800000 : f32
    %10 = vector.broadcast %cst : f32 to vector<1x128xf32>
    %11 = arith.select %9, %6, %10 : vector<1x128xi1>, vector<1x128xf32>
    %cst_9 = arith.constant dense<0xFF800000> : vector<1xf32>
    %12 = vector.multi_reduction <maximumf>, %11, %cst_9 [1] : vector<1x128xf32> to vector<1xf32>
    %13 = vector.shape_cast %12 : vector<1xf32> to vector<1x1xf32>
    %14 = vector.broadcast %13 : vector<1x1xf32> to vector<1x128xf32>
    %15 = arith.subf %11, %14 : vector<1x128xf32>
    %16 = math.exp %15 : vector<1x128xf32>
    %cst_10 = arith.constant dense<0.000000e+00> : vector<1xf32>
    %17 = vector.multi_reduction <add>, %16, %cst_10 [1] : vector<1x128xf32> to vector<1xf32>
    %18 = vector.shape_cast %17 : vector<1xf32> to vector<1x1xf32>
    %19 = math.log %18 : vector<1x1xf32>
    %20 = arith.addf %13, %19 : vector<1x1xf32>
    %21 = arith.index_cast %arg0 : i32 to index
    %22 = memref.load %arg2[%21] : memref<16xi32, #tpu.memory_space<smem>>
    %23 = vector.broadcast %22 : i32 to vector<1x128xi32>
    %24 = arith.cmpi eq, %7, %23 : vector<1x128xi32>
    %cst_11 = arith.constant 0.000000e+00 : f32
    %25 = vector.broadcast %cst_11 : f32 to vector<1x128xf32>
    %26 = arith.select %24, %6, %25 : vector<1x128xi1>, vector<1x128xf32>
    %cst_12 = arith.constant dense<0.000000e+00> : vector<1xf32>
    %27 = vector.multi_reduction <add>, %26, %cst_12 [1] : vector<1x128xf32> to vector<1xf32>
    %28 = vector.shape_cast %27 : vector<1xf32> to vector<1x1xf32>
    %c0_13 = arith.constant 0 : index
    %c0_14 = arith.constant 0 : index
    %29 = vector.load %arg6[%c0_13, %c0_14] : memref<1x1xf32, #tpu.memory_space<vmem>>, vector<1x1xf32>
    %30 = arith.subf %20, %28 : vector<1x1xf32>
    %31 = arith.addf %29, %30 : vector<1x1xf32>
    %c0_15 = arith.constant 0 : index
    %c0_16 = arith.constant 0 : index
    %32 = vector.load %arg6[%c0_15, %c0_16] : memref<1x1xf32, #tpu.memory_space<vmem>>, vector<1x1xf32>
    tpu.vector_store %arg6[%c0_15, %c0_16], %31 {strides = array<i32>} : memref<1x1xf32, #tpu.memory_space<vmem>>, vector<1x1xf32>,
    %c15_i32 = arith.constant 15 : i32
    %33 = arith.cmpi eq, %arg0, %c15_i32 : i32
    %34 = arith.extui %33 : i1 to i32
    %c0_i32_17 = arith.constant 0 : i32
    %35 = arith.cmpi ne, %34, %c0_i32_17 : i32
    scf.if %35 {
      %c0_18 = arith.constant 0 : index
      %c0_19 = arith.constant 0 : index
      %36 = vector.load %arg6[%c0_18, %c0_19] : memref<1x1xf32, #tpu.memory_space<vmem>>, vector<1x1xf32>
      %cst_20 = arith.constant 6.250000e-02 : f32
      %37 = vector.broadcast %cst_20 : f32 to vector<1x1xf32>
      %38 = arith.mulf %36, %37 : vector<1x1xf32>
      %c0_21 = arith.constant 0 : index
      %c0_22 = arith.constant 0 : index
      %39 = vector.load %arg5[%c0_21, %c0_22] : memref<1x1xf32, #tpu.memory_space<vmem>>, vector<1x1xf32>
      tpu.vector_store %arg5[%c0_21, %c0_22], %38 {strides = array<i32>} : memref<1x1xf32, #tpu.memory_space<vmem>>, vector<1x1xf32>,
    } else {
    }
    return
  }
  func.func @transform_0(%arg0: i32, %arg1: memref<16xi32, #tpu.memory_space<smem>>, %arg2: memref<16xi32, #tpu.memory_space<smem>>) -> (i32, i32, i32) {
    %0 = arith.index_cast %arg0 : i32 to index
    %1 = memref.load %arg1[%0] : memref<16xi32, #tpu.memory_space<smem>>
    %c0_i32 = arith.constant 0 : i32
    %c0_i32_0 = arith.constant 0 : i32
    %c0_i32_1 = arith.constant 0 : i32
    return %1, %c0_i32, %c0_i32_0 : i32, i32, i32
  }
  func.func @transform_1(%arg0: i32, %arg1: memref<16xi32, #tpu.memory_space<smem>>, %arg2: memref<16xi32, #tpu.memory_space<smem>>) -> (i32, i32, i32) {
    %c0_i32 = arith.constant 0 : i32
    %c0_i32_0 = arith.constant 0 : i32
    %c0_i32_1 = arith.constant 0 : i32
    return %arg0, %c0_i32, %c0_i32_0 : i32, i32, i32
  }
  func.func @transform_2(%arg0: i32, %arg1: memref<16xi32, #tpu.memory_space<smem>>, %arg2: memref<16xi32, #tpu.memory_space<smem>>) -> (i32, i32) {
    %c0_i32 = arith.constant 0 : i32
    %c0_i32_0 = arith.constant 0 : i32
    %c0_i32_1 = arith.constant 0 : i32
    return %c0_i32, %c0_i32_0 : i32, i32
  }
}

</mosaic_0001>

<bundles_post_ra>
// kernel: _bigram_train_jit.1
= control target key start
LH: loop header
LB: loop body
LE: loop exit
PB: predicated region body
PF: predicated region fallthrough
CT: control target
= control target key end

     0   :  { %s475_s21 = smov [#allocation4]   ;;  %s476_s22 = smov [#allocation5]   ;;  %s619_s0 = inlined_call_operand.vmem [shape: s32[16], index: 0, kind: input, shape index: {}]   ;;  %s620_s2 = inlined_call_operand.vmem [shape: f32[65,1,128], index: 2, kind: input, shape index: {}]   ;;  %s621_s3 = inlined_call_operand.hbm [shape: f32[16,1,128], index: 3, kind: output, shape index: {0}]   ;;  %s622_s4 = inlined_call_operand.hbm [shape: f32[1,1], index: 4, kind: output, shape index: {1}]   ;;  %s623_s1 = inlined_call_operand.vmem [shape: s32[16], index: 1, kind: input, shape index: {}]  }
   0x1   :  { %s11_s17 = sshll.u32 %s619_s0, 4  ;;  %s16_s20 = sshll.u32 %s623_s1, 4  ;;  %s12_s17 = int_to_ptr.vmem [resolvable:$true] %s11_s17  ;;  %s17_s20 = int_to_ptr.vmem [resolvable:$true] %s16_s20 }
   0x2   :  { %14 = dma.vmem_to_smem %s12_s17, 16, %s475_s21, [#allocation3] }
   0x3   :  { %19 = dma.vmem_to_smem %s17_s20, 16, %s476_s22, [#allocation3] }
   0x4   :  { %449 = dma.done.wait [#allocation3], 32 }
   0x5   :  { %450 = vsyncadd [#allocation3], 4294967264 }
   0x6   :  { %22 = sfence }
   0x7   :  { %23 = vsyncpa [#allocation7], 0 }
   0x8   :  { %25 = vsyncpa [#allocation7 + $0x1], 0 }
   0x9   :  { %26 = vsyncpa [#allocation9], 0  ;;  %s510_s23 = smov 0   ;;  %s512_s24 = smov 0  }
   0xa   :  { %s514_s0 = smov 0   ;;  %s516_s25 = smov 0  }
   0xb LB: > { %s531_s1 = sadd.s32 4294967295, %s473_s25   ;;  %s290_s26 = sadd.s32 4294967294, %s473_s25   ;;  %s473_s25 = sphi %s516_s25, %s629_s25   ;;  %s469_s0 = sphi %s514_s0, %s628_s0   ;;  %s465_s24 = sphi %s512_s24, %s627_s24   ;;  %s461_s23 = sphi %s510_s23, %s626_s23  }
   0xc   : > { %s535_s27 = sadd.s32 1, %s473_s25   ;;  %s67_s28 = sadd.s32 1, %s469_s0 }
   0xd   : > { %s64_s29 = ssub.s32 %s473_s25, %s535_s27  ;;  %p77_p0 = scmp.ne.s32.totalorder %s469_s0, %s465_s24 }
   0xe   : > { %p65_p1 = scmp.eq.s32.totalorder %s64_s29, 0  ;;  %p78_p2 = scmp.eq.s32.totalorder %s531_s1, 15 }
   0xf   : > { %p83_p3 = scmp.ne.s32.totalorder %s465_s24, %s461_s23  ;;  %p84_p4 = scmp.eq.s32.totalorder %s290_s26, 15 }
  0x10   : > { %s546_s30 = scalar_select %p65_p1, %s469_s0, %s67_s28  }
  0x11   : > { %p550_p5 = por %p78_p2, %p77_p0  ;;  %p554_p6 = por %p84_p4, %p83_p3 }
  0x12   : > { %p293_p7 = scmp.ge.s32.totalorder %s473_s25, 1  ;;  %p131_p8 = scmp.lt.s32.totalorder %s473_s25, 17 }
  0x14   : > { %p132_p9 = pnand %p293_p7, %p131_p8 }
  0x15   : > { %s147_s7 = sand.u32 (!%p132_p9), 1, %s465_s24   ;;  %s151_s8 = sld [smem:[#allocation4 + %s531_s1]] (!%p132_p9) }
  0x16   : > { %135 = sbr.rel (%p132_p9) target bundleno = 330 (0x14a), region = 24  ;;  %s567_s12 = scalar_lea.vmem (!%p132_p9), [#allocation6], %s147_s7 }
  0x17   : > { %p294_p11 = scmp.ne.s32.totalorder (!%p132_p9), %s531_s1, 0 }
  0x1b   : > { %p152_p10 = scmp.lt.s32.totalorder %s151_s8, 64  ;;  %159 = sbr.rel (%p294_p11) target bundleno = 34 (0x22), region = 28 }
  0x1d   : > { %s631_s8 = smov (!%p152_p10, %s151_s8), 64 }
  0x1e   : > { %s154_s11 = scalar_lea.vmem %s620_s2, %s631_s8 }
  0x20   : > { %vm160_vm0 = vcmask 0   ;;  %v477_v0 = vmov 0.0  }
  0x21   : > { %161 = vst.msk [vmem:[#allocation2] sm:$0x1] %vm160_vm0, %v477_v0 }
  0x22 PF: > { %v165_v1 = vlaneseq  ;;  %v164_v2 = vld [vmem:[%s154_s11] sm:$0x1]  ;;  %vm169_vm1 = vcmask 1040384   ;;  %s182_s13 = sld [smem:[#allocation5 + %s531_s1]]  ;;  %vm192_vm4 = vcmask 0   ;;  %p295_p12 = scmp.ne.s32.totalorder %s531_s1, 15 }
  0x23   : > { %v162_v14 = vld [vmem:[%s154_s11] sm:$0x1] }
  0x24   : > { %v166_v3 = vand.u32 127, %v165_v1  ;;  %163 = vst [vmem:[%s567_s12] sm:$0x1] %v162_v14 }
  0x26   : > { %vm167_vm2 = vcmp.lt.s32.totalorder %v166_v3, 65 }
  0x27   : > { %v168_v4 = vsel %vm167_vm2, %v164_v2, -inf }
  0x28   : > { %v170_v5 = vsel %vm169_vm1, %v168_v4, -inf  ;;  %v183_v6 = vstv %s182_s13  ;;  %v189_v20 = vld [vmem:[#allocation2] sm:$0x1] }
  0x29   : > { %171 = vmax.xlane.f32.xlu0 %v170_v5  ;;  %vm184_vm3 = vcmp.eq.s32.totalorder %v166_v3, %v183_v6 }
  0x2a   : > { %v185_v7 = vsel %vm184_vm3, %v164_v2, 0.0 }
  0x2b   : > { %v186_v8 = vsel %vm169_vm1, %v185_v7, 0.0 }
  0x2c   : > { %187 = vadd.xlane.f32.xlu1 %v186_v8 }
  0x9c   : > { %v172_v9 = vpop.xlane.xlu0 %171 }
  0x9d   : > { %v173_v10 = vsub.f32 %v168_v4, %v172_v9 }
  0x9f   : > { %v174_v11 = vmul.f32 1.442695, %v173_v10  ;;  %v188_v18 = vpop.xlane.xlu1 %187 }
  0xa1   : > { %349 = vpow2.f32 %v174_v11 }
  0xa7   : > { %v350_v12 = vpop.eup %349 }
  0xa8   : > { %v176_v13 = vsel %vm169_vm1, %v350_v12, 0.0 }
  0xa9   : > { %177 = vadd.xlane.f32.xlu0 %v176_v13 }
 0x11c   : > { %v178_v15 = vpop.xlane.xlu0 %177 }
 0x11d   : > { %351 = vlog2.f32 %v178_v15 }
 0x123   : > { %v352_v16 = vpop.eup %351 }
 0x124   : > { %v180_v17 = vmul.f32 0.6931472, %v352_v16 }
 0x126   : > { %v181_v19 = vadd.f32 %v180_v17, %v172_v9 }
 0x128   : > { %v190_v21 = vsub.f32 %v181_v19, %v188_v18  ;;  %197 = sbr.rel (%p295_p12) target bundleno = 311 (0x137), region = 32 }
 0x12a   : > { %v191_v22 = vadd.f32 %v190_v21, %v189_v20 }
 0x12c   : > { %193 = vst.msk [vmem:[#allocation2] sm:$0x1] %vm192_vm4, %v191_v22 }
 0x133   : > { %v198_v23 = vld [vmem:[#allocation2] sm:$0x1] }
 0x134   : > { %v199_v24 = vmul.f32 0.0625, %v198_v23 }
 0x136   : > { %200 = vst.msk [vmem:[#allocation8] sm:$0x1] %vm192_vm4, %v199_v24 }
 0x137 PF: > { %s210_s16 = scalar_lea.hbm %s621_s3, %s531_s1  ;;  %s212_s17 = sshll.u32 %s567_s12, 4  ;;  %s213_s17 = int_to_ptr.vmem [resolvable:$true] %s212_s17 }
 0x138   : > { %s214_s18 = sshll.u32 %s210_s16, 4  ;;  %s202_s19 = scalar_lea.sflag [#allocation7], %s147_s7  ;;  %s215_s18 = int_to_ptr.hbm [resolvable:$true] %s214_s18 }
 0x139   : > { %s391_s20 = sshra.s32 %s215_s18, 4  ;;  %s397_s28 = scalar_lea.hbm %s621_s3, 16  ;;  %s392_s20 = int_to_ptr.hbm [resolvable:$true] %s391_s20 }
 0x13a   : > { %s393_s21 = scalar_lea.hbm %s392_s20, 1  ;;  %p398_p3 = scmp.lt.s32.totalorder %s392_s20, %s621_s3 }
 0x13b   : > { %p394_p13 = scmp.ne.s32.totalorder %s392_s20, %s393_s21  ;;  %p399_p4 = scmp.lt.s32.totalorder %s397_s28, %s393_s21 }
 0x13d   : > { %p395_p0 = pnand %p394_p13, %p550_p5  ;;  %p400_p7 = por %p399_p4, %p398_p3 }
 0x13f   : > { %p396_p1 = pneg %p395_p0 }
 0x141   : > { %p401_p8 = pnand %p400_p7, %p396_p1 }
 0x143   : > { %404 = shalt.err (!%p401_p8)
}
 0x144   : > { %300 = dma.vmem_to_hbm [thread:$0]  (%p550_p5), %s213_s17, 16, %s215_s18, %s202_s19  }
 0x145   : > { %s226_s10 = sshll.u32 %s622_s4, 4  ;;  %s478_s11 = smov [#allocation8]   ;;  %s227_s10 = int_to_ptr.hbm [resolvable:$true] %s226_s10 }
 0x146   : > { %s224_s12 = sshll.u32 %s478_s11, 4  ;;  %s225_s12 = int_to_ptr.vmem [resolvable:$true] %s224_s12 }
 0x147   : > { %302 = dma.vmem_to_hbm [thread:$0]  (%p78_p2), %s225_s12, 16, %s227_s10, [#allocation9]  }
 0x148   : > { %452 = dma.done.wait (%p78_p2), [#allocation9], 16  }
 0x149   : > { %454 = vsyncadd (%p78_p2), [#allocation9], 4294967280 }
 0x14a PF: > { %p312_p5 = scmp.ge.s32.totalorder %s473_s25, 2  ;;  %s243_s5 = sand.u32 1, %s461_s23  }
 0x14b   : > { %s244_s13 = scalar_lea.sflag [#allocation7], %s243_s5 }
 0x14c   : > { %p307_p9 = pnand %p312_p5, %p554_p6 }
 0x14e   : > { %p308_p10 = pneg %p307_p9 }
 0x150   : > { %456 = dma.done.wait (%p308_p10), %s244_s13, 16  }
 0x151   : > { %458 = vsyncadd (%p308_p10), %s244_s13, 4294967280  ;;  %p29_p11 = scmp.ge.s32.totalorder %s535_s27, 18   ;;  %s626_s23 = smov %s465_s24 }
 0x152   : > { %s627_s24 = smov %s469_s0  ;;  %s628_s0 = smov %s546_s30 }
 0x153   : > { %s629_s25 = smov %s535_s27  ;;  %31 = sbr.rel (!%p29_p11) target bundleno = 11 (0xb), region = 75 }
 0x158   :  { %249 = vsyncpa [#allocation7], 1 }
 0x159   :  { %251 = vsyncpa [#allocation7 + $0x1], 1 }
 0x15a   :  { %252 = vsyncpa [#allocation9], 1 }

</bundles_post_ra>
